<compile_context>
chip_gen: v5e
topology: v5e:2x2
jax: 0.10.0
libtpu: 0.0.40
codegen_flags: <defaults>
</compile_context>

<pallas_src>
import jax
import jax.numpy as jnp
from jax.experimental import pallas as pl
from jax.experimental.pallas import tpu as pltpu


def _exp_last_channel_kernel(x_ref, o_ref):
    # x_ref / o_ref: (1, 1, bh, W) block of the LAST channel only.
    o_ref[...] = jnp.exp(x_ref[...])


def _pick_block_rows(H, W, itemsize, target_bytes=2 * 1024 * 1024):
    """Largest divisor of H (multiple of 8) whose block fits ~target_bytes."""
    if H * W * itemsize <= target_bytes:
        return H
    best = H
    for bh in range(8, H, 8):
        if H % bh == 0 and bh * W * itemsize <= target_bytes:
            best = bh
    return best


def exp_activation(x):
    """x: (N, C, H, W). Returns same-shape array with exp applied to the last
    channel only; all other channels pass through untouched via aliasing."""
    N, C, H, W = x.shape
    bh = _pick_block_rows(H, W, x.dtype.itemsize)

    spec = pl.BlockSpec((1, 1, bh, W), lambda i, r: (i, C - 1, r, 0))

    return pl.pallas_call(
        _exp_last_channel_kernel,
        out_shape=jax.ShapeDtypeStruct((N, C, H, W), x.dtype),
        grid=(N, H // bh),
        in_specs=[spec],
        out_specs=spec,
        input_output_aliases={0: 0},
        compiler_params=pltpu.CompilerParams(
            dimension_semantics=("parallel", "parallel"),
        ),
    )(x)


def _ref_exp_radius(x):
    # Pure-JAX reference mirroring the PyTorch in-place semantics.
    return x.at[:, -1, :, :].set(jnp.exp(x[:, -1, :, :]))


if __name__ == "__main__":
    key = jax.random.PRNGKey(0)
    N, C, H, W = 2, 4, 16, 16
    x = jax.random.normal(key, (N, C, H, W), dtype=jnp.float32)

    ref = _ref_exp_radius(x)  # compute reference before the (aliasing) kernel

    out = jax.block_until_ready(exp_activation(x))

    assert out.shape == x.shape and out.dtype == x.dtype
    assert jnp.allclose(out, ref, rtol=1e-6, atol=1e-6)

    print("KERNEL_OK")
</pallas_src>

<mosaic_0001>
module attributes {stable_mosaic.version = 11 : i64} {
  func.func @_exp_last_channel_kernel(%arg0: i32, %arg1: i32, %arg2: memref<1x1x16x16xf32, #tpu.memory_space<vmem>>, %arg3: memref<1x1x16x16xf32, #tpu.memory_space<vmem>>) attributes {dimension_semantics = [#tpu.dimension_semantics<parallel>, #tpu.dimension_semantics<parallel>], iteration_bounds = array<i64: 2, 1>, scalar_prefetch = 0 : i64, scratch_operands = 0 : i64, tpu.core_type = #tpu.core_type<tc>, window_params = [{transform_indices = @transform_0, window_bounds = array<i64: 1, 1, 16, 16>}, {transform_indices = @transform_1, window_bounds = array<i64: 1, 1, 16, 16>}]} {
    %c0 = arith.constant 0 : index
    %c0_0 = arith.constant 0 : index
    %c0_1 = arith.constant 0 : index
    %c0_2 = arith.constant 0 : index
    %0 = vector.load %arg2[%c0, %c0_0, %c0_1, %c0_2] : memref<1x1x16x16xf32, #tpu.memory_space<vmem>>, vector<1x1x16x16xf32>
    %1 = math.exp %0 : vector<1x1x16x16xf32>
    %c0_3 = arith.constant 0 : index
    %c0_4 = arith.constant 0 : index
    %c0_5 = arith.constant 0 : index
    %c0_6 = arith.constant 0 : index
    %2 = vector.load %arg3[%c0_3, %c0_4, %c0_5, %c0_6] : memref<1x1x16x16xf32, #tpu.memory_space<vmem>>, vector<1x1x16x16xf32>
    tpu.vector_store %arg3[%c0_3, %c0_4, %c0_5, %c0_6], %1 {strides = array<i32>} : memref<1x1x16x16xf32, #tpu.memory_space<vmem>>, vector<1x1x16x16xf32>,
    return
  }
  func.func @transform_0(%arg0: i32, %arg1: i32) -> (i32, i32, i32, i32) {
    %c3_i32 = arith.constant 3 : i32
    %c0_i32 = arith.constant 0 : i32
    %c0_i32_0 = arith.constant 0 : i32
    return %arg0, %c3_i32, %arg1, %c0_i32 : i32, i32, i32, i32
  }
  func.func @transform_1(%arg0: i32, %arg1: i32) -> (i32, i32, i32, i32) {
    %c3_i32 = arith.constant 3 : i32
    %c0_i32 = arith.constant 0 : i32
    %c0_i32_0 = arith.constant 0 : i32
    return %arg0, %c3_i32, %arg1, %c0_i32 : i32, i32, i32, i32
  }
}

</mosaic_0001>

<bundles_post_ra>
// kernel: tpu_custom_call.1
= control target key start
LH: loop header
LB: loop body
LE: loop exit
PB: predicated region body
PF: predicated region fallthrough
CT: control target
= control target key end

     0   :  { %6 = vsyncpa [#allocation3], 0  ;;  %s610_s0 = inlined_call_operand.hbm [shape: f32[2,4,16,16], index: 0, kind: input, shape index: {}, may-alias: {0,1}]   ;;  %s611_s1 = inlined_call_operand.hbm [shape: f32[2,4,16,16], index: 1, kind: output, shape index: {}, may-alias: {0,1}]  }
   0x1   :  { %8 = vsyncpa [#allocation3 + $0x1], 0 }
   0x2   :  { %9 = vsyncpa [#allocation4], 0 }
   0x3   :  { %11 = vsyncpa [#allocation4 + $0x1], 0  ;;  %s490_s6 = smov 0   ;;  %s492_s7 = smov 0  }
   0x4   :  { %s494_s8 = smov 0   ;;  %s496_s9 = smov 0  }
   0x5   :  { %s498_s10 = smov 0   ;;  %s500_s11 = smov 0  }
   0x6 LB: > { %s275_s12 = sadd.s32 4294967295, %s474_s11   ;;  %s276_s13 = sadd.s32 4294967294, %s474_s11   ;;  %s474_s11 = sphi %s500_s11, %s17_s11   ;;  %s470_s10 = sphi %s498_s10, %s620_s10   ;;  %s466_s9 = sphi %s496_s9, %s619_s9   ;;  %s462_s8 = sphi %s494_s8, %s618_s8   ;;  %s458_s7 = sphi %s492_s7, %s617_s7   ;;  %s454_s6 = sphi %s490_s6, %s616_s6  }
   0x7   : > { %s29_s14 = sadd.s32 1, %s470_s10  ;;  %s38_s15 = sadd.s32 1, %s462_s8 }
   0x8   : > { %p31_p0 = scmp.ge.s32.totalorder %s29_s14, 2  ;;  %p45_p1 = scmp.ne.s32.totalorder %s462_s8, %s458_s7 }
   0x9   : > { %p46_p2 = scmp.eq.s32.totalorder %s474_s11, 0  ;;  %p51_p3 = scmp.ne.s32.totalorder %s458_s7, %s454_s6 }
   0xa   : > { %s622_s14 = smov (%p31_p0, %s29_s14), 0  ;;  %p52_p5 = scmp.eq.s32.totalorder %s275_s12, 0 }
   0xb   : > { %p531_p4 = por %p46_p2, %p45_p1  ;;  %s33_s17 = ssub.s32 %s470_s10, %s622_s14 }
   0xc   : > { %p77_p6 = scmp.eq.s32.totalorder %s275_s12, 1  ;;  %p36_p7 = scmp.eq.s32.totalorder %s33_s17, 0 }
   0xd   : > { %p537_p8 = por %p52_p5, %p51_p3  ;;  %p83_p10 = scmp.eq.s32.totalorder %s276_s13, 1 }
   0xe   : > { %p541_p9 = por %p77_p6, %p45_p1  ;;  %p278_p12 = scmp.ge.s32.totalorder %s474_s11, 2 }
   0xf   : > { %s546_s20 = scalar_select %p36_p7, %s462_s8, %s38_s15  }
  0x10   : > { %p548_p11 = por %p83_p10, %p51_p3  ;;  %p304_p13 = scmp.lt.s32.totalorder %s474_s11, 2 }
  0x11   : > { %s103_s22 = sand.u32 1, %s462_s8   ;;  %s290_s24 = sshll.u32 %s470_s10, 6 }
  0x12   : > { %s279_s23 = sshll.u32 %s103_s22, 4  ;;  %s220_s27 = scalar_lea.hbm %s610_s0, %s290_s24 }
  0x13   : > { %s107_s28 = scalar_lea.vmem [#allocation2], %s279_s23  ;;  %s221_s30 = scalar_lea.hbm %s220_s27, 48 }
  0x14   : > { %s118_s29 = sshll.u32 %s107_s28, 4  ;;  %s116_s2 = sshll.u32 %s221_s30, 4  ;;  %s119_s29 = int_to_ptr.vmem [resolvable:$true] %s118_s29  ;;  %s117_s2 = int_to_ptr.hbm [resolvable:$true] %s116_s2 }
  0x15   : > { %p297_p0 = pnand %p304_p13, %p531_p4  ;;  %s104_s3 = scalar_lea.sflag [#allocation3], %s103_s22 }
  0x16   : > { %s476_s4 = smov 128   ;;  %s477_s5 = smov 8  }
  0x17   : > { %299 = dma.hbm_to_vmem [thread:$0]  (!%p297_p0), %s117_s2, 256, %s119_s29, %s104_s3, %s476_s4, %s476_s4, %s477_s5  }
  0x18   : > { %p282_p1 = scmp.ge.s32.totalorder %s474_s11, 1  ;;  %p126_p2 = scmp.lt.s32.totalorder %s474_s11, 3 }
  0x1a   : > { %p127_p3 = pnand %p282_p1, %p126_p2 }
  0x1b   : > { %s564_s12 = sand.u32 (!%p127_p3), 1, %s458_s7  }
  0x1c   : > { %130 = sbr.rel (%p127_p3) target bundleno = 51 (0x33), region = 24  ;;  %s283_s13 = sshll.u32 (!%p127_p3), %s564_s12, 4 }
  0x1d   : > { %s133_s15 = scalar_lea.sflag (!%p127_p3), [#allocation3], %s564_s12  ;;  %s136_s17 = scalar_lea.vmem (!%p127_p3), [#allocation2], %s283_s13 }
  0x21   : > { %445 = dma.done.wait (%p537_p8), %s133_s15, 256  }
  0x22   : > { %447 = vsyncadd (%p537_p8), %s133_s15, 4294967040  ;;  %s291_s16 = sshll.u32 %s466_s9, 6  ;;  %v158_v0 = vld [vmem:[%s136_s17] sm:$0xff]  ;;  %v159_v1 = vld [vmem:[%s136_s17 + $0x8] sm:$0xff]  ;;  %s155_s26 = scalar_lea.vmem [#allocation5], %s283_s13  ;;  %vm164_vm0 = vcmask 130048  }
  0x23   : > { %s238_s24 = scalar_lea.hbm %s611_s1, %s291_s16  ;;  %v160_v2 = vmul.f32 1.442695, %v158_v0  ;;  %v162_v3 = vmul.f32 1.442695, %v159_v1  ;;  %s183_s27 = sshll.u32 %s155_s26, 4  ;;  %s184_s27 = int_to_ptr.vmem [resolvable:$true] %s183_s27 }
  0x24   : > { %s239_s25 = scalar_lea.hbm %s238_s24, 48  ;;  %s168_s9 = scalar_lea.sflag [#allocation4], %s564_s12 }
  0x25   : > { %358 = vpow2.f32 %v160_v2  ;;  %s185_s28 = sshll.u32 %s239_s25, 4  ;;  %s412_s3 = scalar_lea.hbm %s611_s1, 128  ;;  %s186_s28 = int_to_ptr.hbm [resolvable:$true] %s185_s28 }
  0x26   : > { %360 = vpow2.f32 %v162_v3  ;;  %s406_s18 = sshra.s32 %s186_s28, 4  ;;  %s407_s18 = int_to_ptr.hbm [resolvable:$true] %s406_s18 }
  0x27   : > { %s408_s29 = scalar_lea.hbm %s407_s18, 16  ;;  %p413_p7 = scmp.lt.s32.totalorder %s407_s18, %s611_s1 }
  0x28   : > { %p409_p4 = scmp.ne.s32.totalorder %s407_s18, %s408_s29  ;;  %p414_p8 = scmp.lt.s32.totalorder %s412_s3, %s408_s29 }
  0x2a   : > { %p410_p5 = pnand %p409_p4, %p541_p9  ;;  %p415_p10 = por %p414_p8, %p413_p7 }
  0x2b   : > { %v359_v4 = vpop.eup %358 }
  0x2c   : > { %v361_v5 = vpop.eup %360  ;;  %165 = vst.msk [vmem:[%s155_s26] sm:$0xff] %vm164_vm0, %v359_v4  ;;  %p411_p6 = pneg %p410_p5 }
  0x2d   : > { %166 = vst.msk [vmem:[%s155_s26 + $0x8] sm:$0xff] %vm164_vm0, %v361_v5 }
  0x2e   : > { %p416_p13 = pnand %p415_p10, %p411_p6 }
  0x30   : > { %419 = shalt.err (!%p416_p13)
}
  0x31   : > { %s478_s12 = smov 128   ;;  %s479_s13 = smov 8  }
  0x32   : > { %294 = dma.vmem_to_hbm [thread:$0]  (%p541_p9), %s184_s27, 256, %s186_s28, %s168_s9, %s478_s12, %s478_s12, %s479_s13  }
  0x33 PF: > { %s200_s15 = sand.u32 1, %s454_s6   ;;  %p301_p0 = pnand %p278_p12, %p548_p11 }
  0x34   : > { %s201_s17 = scalar_lea.sflag [#allocation4], %s200_s15 }
  0x35   : > { %p302_p1 = pneg %p301_p0 }
  0x37   : > { %449 = dma.done.wait (%p302_p1), %s201_s17, 256  }
  0x38   : > { %451 = vsyncadd (%p302_p1), %s201_s17, 4294967040  ;;  %s17_s11 = sadd.s32 1, %s474_s11   ;;  %s616_s6 = smov %s458_s7 }
  0x39   : > { %p14_p2 = scmp.ge.s32.totalorder %s17_s11, 4   ;;  %s617_s7 = smov %s462_s8 }
  0x3a   : > { %s618_s8 = smov %s546_s20  ;;  %s619_s9 = smov %s470_s10 }
  0x3b   : > { %s620_s10 = smov %s622_s14  ;;  %16 = sbr.rel (!%p14_p2) target bundleno = 6 (0x6), region = 69 }
  0x40   :  { %207 = vsyncpa [#allocation3], 1 }
  0x41   :  { %209 = vsyncpa [#allocation3 + $0x1], 1 }
  0x42   :  { %210 = vsyncpa [#allocation4], 1 }
  0x43   :  { %212 = vsyncpa [#allocation4 + $0x1], 1 }

</bundles_post_ra>
